<compile_context>
chip_gen: v7x
topology: tpu7x:2x2x1
jax: 0.10.0
libtpu: 0.0.40
codegen_flags: <defaults>
</compile_context>

<pallas_src>
import functools

import jax
import jax.numpy as jnp
from jax.experimental import pallas as pl
from jax.experimental.pallas import tpu as pltpu


def coord_attention_kernel(H, W, x_ref, p_ref, inv_ref, eh_ref, ew_ref,
                           w1_ref, b1_ref, w2_ref, b2_ref, w3_ref, b3_ref, o_ref):
    """One grid step: NB batch elements, each a lane-dense (C, H*W) tile."""
    NB = x_ref.shape[0]

    p = p_ref[...]       # (HW, H+W) binary, x dtype   (segment-sum pooling matrix)
    inv = inv_ref[...]   # (1, H+W)  f32               (1/W for first H cols, 1/H for last W)
    eh = eh_ref[...]     # (H, HW)   f32 one-hot       (expand out_h along lanes)
    ew = ew_ref[...]     # (W, HW)   f32 one-hot       (expand out_w along lanes)
    w1 = w1_ref[...]     # (Ct, C)   BN-folded conv1 weight
    b1 = b1_ref[...]     # (Ct, 1)   BN-folded conv1 bias
    w2 = w2_ref[...]     # (Co, Ct)
    b2 = b2_ref[...]     # (Co, 1)
    w3 = w3_ref[...]     # (Co, Ct)
    b3 = b3_ref[...]     # (Co, 1)

    # Static (small) loop over the batch elements in this block.
    for n in range(NB):
        xb = x_ref[n]                                                 # (C, HW), native dtype

        # pool_h / pool_w as one matmul: column h sums row h, column H+w sums col w.
        sums = jnp.dot(xb, p, preferred_element_type=jnp.float32)     # (C, H+W) f32

        # conv1 (BN folded) ; 1/W,1/H applied as a per-column scale post-matmul.
        y = jnp.dot(w1, sums, preferred_element_type=jnp.float32) * inv + b1   # (Ct, H+W)

        # h_swish(y) = y * relu6(y + 3) / 6
        y = y * (jnp.clip(y + 3.0, 0.0, 6.0) * (1.0 / 6.0))

        a_h = y[:, :H]                                                # (Ct, H)
        a_w = y[:, H:]                                                # (Ct, W)

        out_h = jax.nn.sigmoid(
            jnp.dot(w2, a_h, preferred_element_type=jnp.float32) + b2)   # (Co, H)
        out_w = jax.nn.sigmoid(
            jnp.dot(w3, a_w, preferred_element_type=jnp.float32) + b3)   # (Co, W)

        # Expand the small gates back to the lane-dense grid via one-hot matmuls:
        #   gate[c, h*W + w] = out_h[c, h] * out_w[c, w]
        gate = (jnp.dot(out_h, eh, preferred_element_type=jnp.float32) *
                jnp.dot(out_w, ew, preferred_element_type=jnp.float32))  # (Co, HW) f32

        # Final gating multiply in x's native dtype; lane-dense store.
        o_ref[n] = (xb * gate.astype(xb.dtype)).astype(o_ref.dtype)


def _choose_nb(N, C, HW, itemsize, target_bytes=2 * 1024 * 1024):
    """Largest divisor of N whose block fits ~target_bytes, keeping >=2 grid steps if N>=2."""
    nb = 1
    for cand in range(1, N + 1):
        if N % cand:
            continue
        if cand * C * HW * itemsize > target_bytes:
            break
        if N >= 2 and N // cand < 2:
            break
        nb = cand
    return nb


def coord_attention(x, params, *, nb=None):
    N, C, H, W = x.shape
    w1, b1, bn_scale, bn_shift, w2, b2, w3, b3 = params
    HW = H * W
    L = H + W

    # Fold eval-mode BatchNorm into conv1 (numerically identical).
    w1f = (w1 * bn_scale).astype(jnp.float32)                    # (Ct, C)
    b1f = (b1 * bn_scale + bn_shift).astype(jnp.float32)         # (Ct, 1)
    w2f = w2.astype(jnp.float32)
    b2f = b2.astype(jnp.float32)
    w3f = w3.astype(jnp.float32)
    b3f = b3.astype(jnp.float32)

    # Constant pooling / expansion matrices (binary, exact in any dtype).
    hw_idx = jnp.arange(HW)
    p_h = (hw_idx[:, None] // W) == jnp.arange(H)[None, :]       # (HW, H)
    p_w = (hw_idx[:, None] % W) == jnp.arange(W)[None, :]        # (HW, W)
    pmat = jnp.concatenate([p_h, p_w], axis=1).astype(x.dtype)   # (HW, L)
    inv = jnp.concatenate([jnp.full((H,), 1.0 / W, jnp.float32),
                           jnp.full((W,), 1.0 / H, jnp.float32)])[None, :]  # (1, L)
    eh = p_h.T.astype(jnp.float32)                               # (H, HW)
    ew = p_w.T.astype(jnp.float32)                               # (W, HW)

    if nb is None:
        nb = _choose_nb(N, C, HW, jnp.dtype(x.dtype).itemsize)
    grid = (N // nb,)

    x_flat = x.reshape(N, C, HW)                                 # lane-dense layout

    def full(a):
        return pl.BlockSpec(a.shape, lambda i, _nd=a.ndim: (0,) * _nd)

    out_flat = pl.pallas_call(
        functools.partial(coord_attention_kernel, H, W),
        out_shape=jax.ShapeDtypeStruct((N, C, HW), x.dtype),
        grid=grid,
        in_specs=[
            pl.BlockSpec((nb, C, HW), lambda i: (i, 0, 0)),      # x (lane-dense)
            full(pmat), full(inv), full(eh), full(ew),
            full(w1f), full(b1f), full(w2f), full(b2f), full(w3f), full(b3f),
        ],
        out_specs=pl.BlockSpec((nb, C, HW), lambda i: (i, 0, 0)),
        compiler_params=pltpu.CompilerParams(
            dimension_semantics=("parallel",),
            vmem_limit_bytes=48 * 1024 * 1024,   # headroom on v5e/v6e, < v7x 64 MiB physical
        ),
    )(x_flat, pmat, inv, eh, ew, w1f, b1f, w2f, b2f, w3f, b3f)

    # TODO(synk): for N == 1 on v7x, add a second parallel grid axis tiling C so both
    # TensorCores are used; with N >= 2 the NB heuristic already keeps >=2 grid steps.
    return out_flat.reshape(N, C, H, W)


def init_params(key, in_channels, out_channels, reduction=32):
    temp_c = max(8, in_channels // reduction)
    ks = jax.random.split(key, 10)
    w1 = 0.1 * jax.random.normal(ks[0], (temp_c, in_channels), jnp.float32)
    b1 = 0.1 * jax.random.normal(ks[1], (temp_c, 1), jnp.float32)
    # BatchNorm2d (eval mode) raw stats; folded inside coord_attention / applied raw in ref.
    gamma = 1.0 + 0.1 * jax.random.normal(ks[2], (temp_c, 1), jnp.float32)
    beta = 0.1 * jax.random.normal(ks[3], (temp_c, 1), jnp.float32)
    rmean = 0.1 * jax.random.normal(ks[4], (temp_c, 1), jnp.float32)
    rvar = 1.0 + 0.1 * jnp.abs(jax.random.normal(ks[5], (temp_c, 1), jnp.float32))
    eps = 1e-5
    bn_scale = gamma / jnp.sqrt(rvar + eps)
    bn_shift = beta - rmean * bn_scale
    w2 = 0.1 * jax.random.normal(ks[6], (out_channels, temp_c), jnp.float32)
    b2 = 0.1 * jax.random.normal(ks[7], (out_channels, 1), jnp.float32)
    w3 = 0.1 * jax.random.normal(ks[8], (out_channels, temp_c), jnp.float32)
    b3 = 0.1 * jax.random.normal(ks[9], (out_channels, 1), jnp.float32)
    return (w1, b1, bn_scale, bn_shift, w2, b2, w3, b3)


def coord_attention_ref(x, params):
    """Pure-JAX reference mirroring the PyTorch forward (BN in eval mode, unfused)."""
    w1, b1, bn_scale, bn_shift, w2, b2, w3, b3 = params
    N, C, H, W = x.shape
    x_h = x.mean(axis=3)                                  # (N, C, H)  pool over W
    x_w = x.mean(axis=2)                                  # (N, C, W)  pool over H
    cat = jnp.concatenate([x_h, x_w], axis=2)             # (N, C, H+W)
    y = jnp.einsum('tc,ncl->ntl', w1, cat) + b1[None]     # conv1 + bias
    y = y * bn_scale[None] + bn_shift[None]               # BN eval mode
    y = y * (jnp.clip(y + 3.0, 0.0, 6.0) / 6.0)           # h_swish
    a_h, a_w = y[:, :, :H], y[:, :, H:]
    out_h = jax.nn.sigmoid(jnp.einsum('ot,ntl->nol', w2, a_h) + b2[None])  # (N, Co, H)
    out_w = jax.nn.sigmoid(jnp.einsum('ot,ntl->nol', w3, a_w) + b3[None])  # (N, Co, W)
    return x * out_w[:, :, None, :] * out_h[:, :, :, None]


if __name__ == "__main__":
    N, C, H, W = 2, 16, 16, 16          # in_channels = out_channels = 16
    key = jax.random.PRNGKey(0)
    kx, kp = jax.random.split(key)
    x = jax.random.normal(kx, (N, C, H, W), jnp.float32)
    params = init_params(kp, in_channels=C, out_channels=C, reduction=32)

    out = jax.block_until_ready(coord_attention(x, params))
    ref = coord_attention_ref(x, params)

    assert out.shape == (N, C, H, W)
    max_err = float(jnp.max(jnp.abs(out - ref)))
    assert jnp.allclose(out, ref, rtol=1e-4, atol=1e-4), max_err
    print("KERNEL_OK")
</pallas_src>

<mosaic_0001>
module attributes {stable_mosaic.version = 11 : i64} {
  func.func @coord_attention_kernel(%arg0: i32, %arg1: memref<1x16x256xf32, #tpu.memory_space<vmem>>, %arg2: memref<256x32xf32, #tpu.memory_space<vmem>>, %arg3: memref<1x32xf32, #tpu.memory_space<vmem>>, %arg4: memref<16x256xf32, #tpu.memory_space<vmem>>, %arg5: memref<16x256xf32, #tpu.memory_space<vmem>>, %arg6: memref<8x16xf32, #tpu.memory_space<vmem>>, %arg7: memref<8x1xf32, #tpu.memory_space<vmem>>, %arg8: memref<16x8xf32, #tpu.memory_space<vmem>>, %arg9: memref<16x1xf32, #tpu.memory_space<vmem>>, %arg10: memref<16x8xf32, #tpu.memory_space<vmem>>, %arg11: memref<16x1xf32, #tpu.memory_space<vmem>>, %arg12: memref<1x16x256xf32, #tpu.memory_space<vmem>>) attributes {dimension_semantics = [#tpu.dimension_semantics<parallel>], iteration_bounds = array<i64: 2>, scalar_prefetch = 0 : i64, scratch_operands = 0 : i64, tpu.core_type = #tpu.core_type<tc>, window_params = [{transform_indices = @transform_0, window_bounds = array<i64: 1, 16, 256>}, {pipeline_mode = #tpu.pipeline_mode<synchronous>, transform_indices = @transform_1, window_bounds = array<i64: 256, 32>}, {pipeline_mode = #tpu.pipeline_mode<synchronous>, transform_indices = @transform_2, window_bounds = array<i64: 1, 32>}, {pipeline_mode = #tpu.pipeline_mode<synchronous>, transform_indices = @transform_3, window_bounds = array<i64: 16, 256>}, {pipeline_mode = #tpu.pipeline_mode<synchronous>, transform_indices = @transform_4, window_bounds = array<i64: 16, 256>}, {pipeline_mode = #tpu.pipeline_mode<synchronous>, transform_indices = @transform_5, window_bounds = array<i64: 8, 16>}, {pipeline_mode = #tpu.pipeline_mode<synchronous>, transform_indices = @transform_6, window_bounds = array<i64: 8, 1>}, {pipeline_mode = #tpu.pipeline_mode<synchronous>, transform_indices = @transform_7, window_bounds = array<i64: 16, 8>}, {pipeline_mode = #tpu.pipeline_mode<synchronous>, transform_indices = @transform_8, window_bounds = array<i64: 16, 1>}, {pipeline_mode = #tpu.pipeline_mode<synchronous>, transform_indices = @transform_9, window_bounds = array<i64: 16, 8>}, {pipeline_mode = #tpu.pipeline_mode<synchronous>, transform_indices = @transform_10, window_bounds = array<i64: 16, 1>}, {transform_indices = @transform_11, window_bounds = array<i64: 1, 16, 256>}]} {
    %c0 = arith.constant 0 : index
    %c0_0 = arith.constant 0 : index
    %0 = vector.load %arg2[%c0, %c0_0] : memref<256x32xf32, #tpu.memory_space<vmem>>, vector<256x32xf32>
    %c0_1 = arith.constant 0 : index
    %c0_2 = arith.constant 0 : index
    %1 = vector.load %arg3[%c0_1, %c0_2] : memref<1x32xf32, #tpu.memory_space<vmem>>, vector<1x32xf32>
    %c0_3 = arith.constant 0 : index
    %c0_4 = arith.constant 0 : index
    %2 = vector.load %arg4[%c0_3, %c0_4] : memref<16x256xf32, #tpu.memory_space<vmem>>, vector<16x256xf32>
    %c0_5 = arith.constant 0 : index
    %c0_6 = arith.constant 0 : index
    %3 = vector.load %arg5[%c0_5, %c0_6] : memref<16x256xf32, #tpu.memory_space<vmem>>, vector<16x256xf32>
    %c0_7 = arith.constant 0 : index
    %c0_8 = arith.constant 0 : index
    %4 = vector.load %arg6[%c0_7, %c0_8] : memref<8x16xf32, #tpu.memory_space<vmem>>, vector<8x16xf32>
    %c0_9 = arith.constant 0 : index
    %c0_10 = arith.constant 0 : index
    %5 = vector.load %arg7[%c0_9, %c0_10] : memref<8x1xf32, #tpu.memory_space<vmem>>, vector<8x1xf32>
    %c0_11 = arith.constant 0 : index
    %c0_12 = arith.constant 0 : index
    %6 = vector.load %arg8[%c0_11, %c0_12] : memref<16x8xf32, #tpu.memory_space<vmem>>, vector<16x8xf32>
    %c0_13 = arith.constant 0 : index
    %c0_14 = arith.constant 0 : index
    %7 = vector.load %arg9[%c0_13, %c0_14] : memref<16x1xf32, #tpu.memory_space<vmem>>, vector<16x1xf32>
    %c0_15 = arith.constant 0 : index
    %c0_16 = arith.constant 0 : index
    %8 = vector.load %arg10[%c0_15, %c0_16] : memref<16x8xf32, #tpu.memory_space<vmem>>, vector<16x8xf32>
    %c0_17 = arith.constant 0 : index
    %c0_18 = arith.constant 0 : index
    %9 = vector.load %arg11[%c0_17, %c0_18] : memref<16x1xf32, #tpu.memory_space<vmem>>, vector<16x1xf32>
    %c0_19 = arith.constant 0 : index
    %c0_20 = arith.constant 0 : index
    %c0_21 = arith.constant 0 : index
    %10 = vector.load %arg1[%c0_19, %c0_20, %c0_21] : memref<1x16x256xf32, #tpu.memory_space<vmem>>, vector<1x16x256xf32>
    %11 = vector.shape_cast %10 : vector<1x16x256xf32> to vector<16x256xf32>
    %cst = arith.constant dense<0.000000e+00> : vector<16x32xf32>
    %12 = tpu.matmul %11, %0, %cst {dimension_numbers = #tpu.dot_dimension_numbers<[1], [0], [0], [1], [0, 0, 1, 1], [], []>} : vector<16x256xf32>, vector<256x32xf32>, vector<16x32xf32> -> vector<16x32xf32>
    %cst_22 = arith.constant dense<0.000000e+00> : vector<8x32xf32>
    %13 = tpu.matmul %4, %12, %cst_22 {dimension_numbers = #tpu.dot_dimension_numbers<[1], [0], [0], [1], [0, 0, 1, 1], [], []>} : vector<8x16xf32>, vector<16x32xf32>, vector<8x32xf32> -> vector<8x32xf32>
    %14 = vector.broadcast %1 : vector<1x32xf32> to vector<8x32xf32>
    %15 = arith.mulf %13, %14 : vector<8x32xf32>
    %16 = vector.broadcast %5 : vector<8x1xf32> to vector<8x32xf32>
    %17 = arith.addf %15, %16 : vector<8x32xf32>
    %cst_23 = arith.constant 3.000000e+00 : f32
    %18 = vector.broadcast %cst_23 : f32 to vector<8x32xf32>
    %19 = arith.addf %17, %18 : vector<8x32xf32>
    %cst_24 = arith.constant 0.000000e+00 : f32
    %cst_25 = arith.constant 6.000000e+00 : f32
    %20 = vector.broadcast %cst_24 : f32 to vector<8x32xf32>
    %21 = arith.maximumf %20, %19 : vector<8x32xf32>
    %22 = vector.broadcast %cst_25 : f32 to vector<8x32xf32>
    %23 = arith.minimumf %22, %21 : vector<8x32xf32>
    %cst_26 = arith.constant 0.166666672 : f32
    %24 = vector.broadcast %cst_26 : f32 to vector<8x32xf32>
    %25 = arith.mulf %23, %24 : vector<8x32xf32>
    %26 = arith.mulf %17, %25 : vector<8x32xf32>
    %27 = vector.extract_strided_slice %26 {offsets = [0, 0], sizes = [8, 16], strides = [1, 1]} : vector<8x32xf32> to vector<8x16xf32>
    %28 = vector.extract_strided_slice %26 {offsets = [0, 16], sizes = [8, 16], strides = [1, 1]} : vector<8x32xf32> to vector<8x16xf32>
    %cst_27 = arith.constant dense<0.000000e+00> : vector<16x16xf32>
    %29 = tpu.matmul %6, %27, %cst_27 {dimension_numbers = #tpu.dot_dimension_numbers<[1], [0], [0], [1], [0, 0, 1, 1], [], []>} : vector<16x8xf32>, vector<8x16xf32>, vector<16x16xf32> -> vector<16x16xf32>
    %30 = vector.broadcast %7 : vector<16x1xf32> to vector<16x16xf32>
    %31 = arith.addf %29, %30 : vector<16x16xf32>
    %32 = arith.negf %31 : vector<16x16xf32>
    %33 = math.exp %32 : vector<16x16xf32>
    %cst_28 = arith.constant 1.000000e+00 : f32
    %34 = vector.broadcast %cst_28 : f32 to vector<16x16xf32>
    %35 = arith.addf %34, %33 : vector<16x16xf32>
    %36 = arith.divf %34, %35 : vector<16x16xf32>
    %cst_29 = arith.constant dense<0.000000e+00> : vector<16x16xf32>
    %37 = tpu.matmul %8, %28, %cst_29 {dimension_numbers = #tpu.dot_dimension_numbers<[1], [0], [0], [1], [0, 0, 1, 1], [], []>} : vector<16x8xf32>, vector<8x16xf32>, vector<16x16xf32> -> vector<16x16xf32>
    %38 = vector.broadcast %9 : vector<16x1xf32> to vector<16x16xf32>
    %39 = arith.addf %37, %38 : vector<16x16xf32>
    %40 = arith.negf %39 : vector<16x16xf32>
    %41 = math.exp %40 : vector<16x16xf32>
    %cst_30 = arith.constant 1.000000e+00 : f32
    %42 = vector.broadcast %cst_30 : f32 to vector<16x16xf32>
    %43 = arith.addf %42, %41 : vector<16x16xf32>
    %44 = arith.divf %42, %43 : vector<16x16xf32>
    %cst_31 = arith.constant dense<0.000000e+00> : vector<16x256xf32>
    %45 = tpu.matmul %36, %2, %cst_31 {dimension_numbers = #tpu.dot_dimension_numbers<[1], [0], [0], [1], [0, 0, 1, 1], [], []>} : vector<16x16xf32>, vector<16x256xf32>, vector<16x256xf32> -> vector<16x256xf32>
    %cst_32 = arith.constant dense<0.000000e+00> : vector<16x256xf32>
    %46 = tpu.matmul %44, %3, %cst_32 {dimension_numbers = #tpu.dot_dimension_numbers<[1], [0], [0], [1], [0, 0, 1, 1], [], []>} : vector<16x16xf32>, vector<16x256xf32>, vector<16x256xf32> -> vector<16x256xf32>
    %47 = arith.mulf %45, %46 : vector<16x256xf32>
    %48 = arith.mulf %11, %47 : vector<16x256xf32>
    %c0_33 = arith.constant 0 : index
    %c0_34 = arith.constant 0 : index
    %c0_35 = arith.constant 0 : index
    %49 = vector.load %arg12[%c0_33, %c0_34, %c0_35] : memref<1x16x256xf32, #tpu.memory_space<vmem>>, vector<1x16x256xf32>
    %50 = vector.shape_cast %49 : vector<1x16x256xf32> to vector<16x256xf32>
    %51 = vector.shape_cast %48 : vector<16x256xf32> to vector<1x16x256xf32>
    tpu.vector_store %arg12[%c0_33, %c0_34, %c0_35], %51 {strides = array<i32>} : memref<1x16x256xf32, #tpu.memory_space<vmem>>, vector<1x16x256xf32>,
    return
  }
  func.func @transform_0(%arg0: i32) -> (i32, i32, i32) {
    %c0_i32 = arith.constant 0 : i32
    %c0_i32_0 = arith.constant 0 : i32
    %c0_i32_1 = arith.constant 0 : i32
    return %arg0, %c0_i32, %c0_i32_0 : i32, i32, i32
  }
  func.func @transform_1(%arg0: i32) -> (i32, i32) {
    %c0_i32 = arith.constant 0 : i32
    %c0_i32_0 = arith.constant 0 : i32
    %c0_i32_1 = arith.constant 0 : i32
    return %c0_i32, %c0_i32_0 : i32, i32
  }
  func.func @transform_2(%arg0: i32) -> (i32, i32) {
    %c0_i32 = arith.constant 0 : i32
    %c0_i32_0 = arith.constant 0 : i32
    %c0_i32_1 = arith.constant 0 : i32
    return %c0_i32, %c0_i32_0 : i32, i32
  }
  func.func @transform_3(%arg0: i32) -> (i32, i32) {
    %c0_i32 = arith.constant 0 : i32
    %c0_i32_0 = arith.constant 0 : i32
    %c0_i32_1 = arith.constant 0 : i32
    return %c0_i32, %c0_i32_0 : i32, i32
  }
  func.func @transform_4(%arg0: i32) -> (i32, i32) {
    %c0_i32 = arith.constant 0 : i32
    %c0_i32_0 = arith.constant 0 : i32
    %c0_i32_1 = arith.constant 0 : i32
    return %c0_i32, %c0_i32_0 : i32, i32
  }
  func.func @transform_5(%arg0: i32) -> (i32, i32) {
    %c0_i32 = arith.constant 0 : i32
    %c0_i32_0 = arith.constant 0 : i32
    %c0_i32_1 = arith.constant 0 : i32
    return %c0_i32, %c0_i32_0 : i32, i32
  }
  func.func @transform_6(%arg0: i32) -> (i32, i32) {
    %c0_i32 = arith.constant 0 : i32
    %c0_i32_0 = arith.constant 0 : i32
    %c0_i32_1 = arith.constant 0 : i32
    return %c0_i32, %c0_i32_0 : i32, i32
  }
  func.func @transform_7(%arg0: i32) -> (i32, i32) {
    %c0_i32 = arith.constant 0 : i32
    %c0_i32_0 = arith.constant 0 : i32
    %c0_i32_1 = arith.constant 0 : i32
    return %c0_i32, %c0_i32_0 : i32, i32
  }
  func.func @transform_8(%arg0: i32) -> (i32, i32) {
    %c0_i32 = arith.constant 0 : i32
    %c0_i32_0 = arith.constant 0 : i32
    %c0_i32_1 = arith.constant 0 : i32
    return %c0_i32, %c0_i32_0 : i32, i32
  }
  func.func @transform_9(%arg0: i32) -> (i32, i32) {
    %c0_i32 = arith.constant 0 : i32
    %c0_i32_0 = arith.constant 0 : i32
    %c0_i32_1 = arith.constant 0 : i32
    return %c0_i32, %c0_i32_0 : i32, i32
  }
  func.func @transform_10(%arg0: i32) -> (i32, i32) {
    %c0_i32 = arith.constant 0 : i32
    %c0_i32_0 = arith.constant 0 : i32
    %c0_i32_1 = arith.constant 0 : i32
    return %c0_i32, %c0_i32_0 : i32, i32
  }
  func.func @transform_11(%arg0: i32) -> (i32, i32, i32) {
    %c0_i32 = arith.constant 0 : i32
    %c0_i32_0 = arith.constant 0 : i32
    %c0_i32_1 = arith.constant 0 : i32
    return %arg0, %c0_i32, %c0_i32_0 : i32, i32, i32
  }
}

</mosaic_0001>

<bundles_post_ra>
// kernel: tpu_custom_call.1
= control target key start
LH: loop header
LB: loop body
LE: loop exit
PB: predicated region body
PF: predicated region fallthrough
CT: control target
= control target key end

     0   :  { %16 = vsyncpa [#allocation3], 0  ;;  %s1695_s0 = inlined_call_operand.vmem [shape: f32[2,16,256], index: 0, kind: input, shape index: {}]   ;;  %s1696_s1 = inlined_call_operand.vmem [shape: f32[256,32], index: 1, kind: input, shape index: {}]   ;;  %s1697_s2 = inlined_call_operand.vmem [shape: f32[1,32], index: 2, kind: input, shape index: {}]   ;;  %s1698_s3 = inlined_call_operand.vmem [shape: f32[16,256], index: 3, kind: input, shape index: {}]   ;;  %s1699_s4 = inlined_call_operand.vmem [shape: f32[16,256], index: 4, kind: input, shape index: {}]   ;;  %s1700_s5 = inlined_call_operand.vmem [shape: f32[8,16], index: 5, kind: input, shape index: {}]   ;;  %s1701_s6 = inlined_call_operand.vmem [shape: f32[8,1], index: 6, kind: input, shape index: {}]   ;;  %s1702_s7 = inlined_call_operand.vmem [shape: f32[16,8], index: 7, kind: input, shape index: {}]   ;;  %s1703_s8 = inlined_call_operand.vmem [shape: f32[16,1], index: 8, kind: input, shape index: {}]   ;;  %s1704_s9 = inlined_call_operand.vmem [shape: f32[16,8], index: 9, kind: input, shape index: {}]   ;;  %s1705_s10 = inlined_call_operand.vmem [shape: f32[16,1], index: 10, kind: input, shape index: {}]   ;;  %s1706_s11 = inlined_call_operand.hbm [shape: f32[2,16,256], index: 11, kind: output, shape index: {}]  }
   0x1   :  { %18 = vsyncpa [#allocation3 + $0x1], 0  ;;  %s1403_s17 = smov 0   ;;  %s1405_s18 = smov 0  }
   0x2   :  { %s1407_s19 = smov 0   ;;  %s1409_s20 = smov 0  }
   0x3 LB: > { %1708 = sst [smem:[#allocation5_spill]] %s1329_s19  ;;  %s1424_s21 = sadd.s32 4294967295, %s1333_s20   ;;  %s1333_s20 = sphi %s1409_s20, %s1716_s20   ;;  %s1329_s19 = sphi %s1407_s19, %s1713_s19   ;;  %s1325_s18 = sphi %s1405_s18, %s1715_s18   ;;  %s1321_s17 = sphi %s1403_s17, %s1714_s17  }
   0x4   : > { %s1072_s22 = sadd.s32 4294967294, %s1333_s20   ;;  %s1428_s23 = sadd.s32 1, %s1333_s20  }
   0x5   : > { %s267_s24 = sadd.s32 1, %s1329_s19  ;;  %s264_s25 = ssub.s32 %s1333_s20, %s1428_s23 }
   0x6   : > { %p277_p0 = scmp.ne.s32.totalorder %s1329_s19, %s1325_s18  ;;  %p265_p1 = scmp.eq.s32.totalorder %s264_s25, 0 }
   0x7   : > { %p278_p2 = scmp.eq.s32.totalorder %s1424_s21, 1  ;;  %p283_p3 = scmp.ne.s32.totalorder %s1325_s18, %s1321_s17 }
   0x8   : > { %p284_p4 = scmp.eq.s32.totalorder %s1072_s22, 1  ;;  %p1075_p7 = scmp.ge.s32.totalorder %s1333_s20, 1 }
   0x9   : > { %s1439_s26 = scalar_select %p265_p1, %s1329_s19, %s267_s24  }
   0xa   : > { %p1441_p5 = por %p278_p2, %p277_p0  ;;  %p1445_p6 = por %p284_p4, %p283_p3 }
   0xb   : > { %1709 = sst [smem:[#allocation6_spill]] %s1439_s26  ;;  %p340_p8 = scmp.lt.s32.totalorder %s1333_s20, 3 }
   0xd   : > { %p341_p9 = pnand %p1075_p7, %p340_p8 }
   0xe   : > { %v401_v0 = vld [vmem:[%s1696_s1 + $0x80] sm:$0xff] (!%p341_p9)  ;;  %v402_v1 = vld [vmem:[%s1696_s1 + $0x88] sm:$0xff] (!%p341_p9)  ;;  %p380_p10 = scmp.lt.s32.totalorder (!%p341_p9), %s1424_s21, 1  ;;  %v403_v5 = vld [vmem:[%s1696_s1 + $0x90] sm:$0xff] (!%p341_p9)  ;;  %v1335_v52 = vmov (!%p341_p9), 0.0|0.0   ;;  %vm1336_vm0 = vmmov (!%p341_p9), 0  }
   0xf   : > { %344 = sbr.rel (%p341_p9) target bundleno = 1093 (0x445), region = 64  ;;  %v385_v2 = vld [vmem:[%s1696_s1] sm:$0xff] (!%p341_p9)  ;;  %v1164_v3 = vpack.c.bf16 (!%p341_p9), %v402_v1, %v401_v0  ;;  %v386_v4 = vld [vmem:[%s1696_s1 + $0x8] sm:$0xff] (!%p341_p9)  ;;  %v404_v6 = vld [vmem:[%s1696_s1 + $0x98] sm:$0xff] (!%p341_p9)  ;;  %1196 = vmatprep.subr.bf16.mxu1 (!%p341_p9), %v1335_v52  ;;  %v1337_v53 = vmov (!%p341_p9), 0.0   ;;  %v1338_v55 = vmov (!%p341_p9), 0  }
  0x10   : > { %v1166_v7 = vpack.c.bf16 (!%p341_p9), %v386_v4, %v385_v2  ;;  %v1168_v8 = vpack.c.bf16 (!%p341_p9), %v404_v6, %v403_v5  ;;  %v387_v9 = vld [vmem:[%s1696_s1 + $0x10] sm:$0xff] (!%p341_p9)  ;;  %v388_v10 = vld [vmem:[%s1696_s1 + $0x18] sm:$0xff] (!%p341_p9)  ;;  %v405_v11 = vld [vmem:[%s1696_s1 + $0xa0] sm:$0xff] (!%p341_p9)  ;;  %1151 = vmatprep.mubr.msk.f32.mxu1 (!%p341_p9), %vm1336_vm0, %v1337_v53  ;;  %1253 = vset.pattern.permute.xlu0 (!%p341_p9), %v1338_v55  ;;  %vm515_vm1 = vcmask (!%p341_p9), 130048   ;;  %vm617_vm2 = vcmask (!%p341_p9), 64512   ;;  %s1339_s12 = smov (!%p341_p9), 112  }
  0x11   : > { %1165 = vmatprep.subr.bf16.mxu0 (!%p341_p9), %v1164_v3  ;;  %v406_v12 = vld [vmem:[%s1696_s1 + $0xa8] sm:$0xff] (!%p341_p9)  ;;  %v1170_v13 = vpack.c.bf16 (!%p341_p9), %v388_v10, %v387_v9  ;;  %v389_v15 = vld [vmem:[%s1696_s1 + $0x20] sm:$0xff] (!%p341_p9)  ;;  %v407_v17 = vld [vmem:[%s1696_s1 + $0xb0] sm:$0xff] (!%p341_p9)  ;;  %1254 = vset.pattern.permute.xlu1 (!%p341_p9), %v1338_v55  ;;  %s377_s16 = sand.u32 (!%p341_p9), 1, %s1325_s18   ;;  %s1099_s25 = sshll.u32 (!%p341_p9), %s1424_s21, 9 }
  0x12   : > { %1167 = vmatpush3.bf16.msra.mxu0 (!%p341_p9), %v1166_v7  ;;  %v1172_v14 = vpack.c.bf16 (!%p341_p9), %v406_v12, %v405_v11  ;;  %v390_v16 = vld [vmem:[%s1696_s1 + $0x28] sm:$0xff] (!%p341_p9)  ;;  %v408_v18 = vld [vmem:[%s1696_s1 + $0xb8] sm:$0xff] (!%p341_p9)  ;;  %v391_v21 = vld [vmem:[%s1696_s1 + $0x30] sm:$0xff] (!%p341_p9)  ;;  %s1076_s22 = sshll.u32 (!%p341_p9), %s377_s16, 5  ;;  %s1340_s14 = smov (!%p341_p9), [#allocation2]  }
  0x13   : > { %1169 = vmatprep.subr.bf16.mxu0 (!%p341_p9), %v1168_v8  ;;  %v1174_v19 = vpack.c.bf16 (!%p341_p9), %v390_v16, %v389_v15  ;;  %v1176_v20 = vpack.c.bf16 (!%p341_p9), %v408_v18, %v407_v17  ;;  %v392_v22 = vld [vmem:[%s1696_s1 + $0x38] sm:$0xff] (!%p341_p9)  ;;  %v409_v23 = vld [vmem:[%s1696_s1 + $0xc0] sm:$0xff] (!%p341_p9)  ;;  %v410_v24 = vld [vmem:[%s1696_s1 + $0xc8] sm:$0xff] (!%p341_p9)  ;;  %s1275_s15 = sshll.u32 (!%p341_p9), %s1340_s14, 4  ;;  %s1276_s15 = int_to_ptr.vmem [resolvable:$false] %s1275_s15 }
  0x14   : > { %v1178_v26 = vpack.c.bf16 (!%p341_p9), %v392_v22, %v391_v21  ;;  %v1180_v27 = vpack.c.bf16 (!%p341_p9), %v410_v24, %v409_v23  ;;  %v393_v28 = vld [vmem:[%s1696_s1 + $0x40] sm:$0xff] (!%p341_p9)  ;;  %v394_v29 = vld [vmem:[%s1696_s1 + $0x48] sm:$0xff] (!%p341_p9)  ;;  %v411_v30 = vld [vmem:[%s1696_s1 + $0xd0] sm:$0xff] (!%p341_p9) }
  0x15   : > { %v412_v31 = vld [vmem:[%s1696_s1 + $0xd8] sm:$0xff] (!%p341_p9)  ;;  %v1182_v32 = vpack.c.bf16 (!%p341_p9), %v394_v29, %v393_v28  ;;  %v395_v34 = vld [vmem:[%s1696_s1 + $0x50] sm:$0xff] (!%p341_p9)  ;;  %v413_v36 = vld [vmem:[%s1696_s1 + $0xe0] sm:$0xff] (!%p341_p9) }
  0x16   : > { %s381_s24 = scalar_select %p380_p10, %s1424_s21, 1  ;;  %1171 = vmatpush3.bf16.msra.mxu0 %v1170_v13  ;;  %v1184_v33 = vpack.c.bf16 %v412_v31, %v411_v30  ;;  %v396_v35 = vld [vmem:[%s1696_s1 + $0x58] sm:$0xff]  ;;  %v414_v37 = vld [vmem:[%s1696_s1 + $0xe8] sm:$0xff]  ;;  %v397_v40 = vld [vmem:[%s1696_s1 + $0x60] sm:$0xff] }
  0x17   : > { %1173 = vmatprep.subr.bf16.mxu0 %v1172_v14  ;;  %v1186_v38 = vpack.c.bf16 %v396_v35, %v395_v34  ;;  %v1188_v39 = vpack.c.bf16 %v414_v37, %v413_v36  ;;  %v398_v41 = vld [vmem:[%s1696_s1 + $0x68] sm:$0xff]  ;;  %v415_v42 = vld [vmem:[%s1696_s1 + $0xf0] sm:$0xff]  ;;  %v416_v43 = vld [vmem:[%s1696_s1 + $0xf8] sm:$0xff]  ;;  %s1654_s21 = scalar_lea.sflag [#allocation3], %s377_s16 }
  0x18   : > { %s1098_s29 = sshll.u32 %s381_s24, 5  ;;  %v1190_v44 = vpack.c.bf16 %v398_v41, %v397_v40  ;;  %v1192_v45 = vpack.c.bf16 %v416_v43, %v415_v42  ;;  %v399_v46 = vld [vmem:[%s1696_s1 + $0x70] sm:$0xff]  ;;  %v400_v47 = vld [vmem:[%s1696_s1 + $0x78] sm:$0xff]  ;;  %v427_v54 = vld [vmem:[%s1701_s6] sm:$0xff] }
  0x19   : > { %s1498_s19 = scalar_lea.vmem %s1695_s0, %s1098_s29  ;;  %v1194_v48 = vpack.c.bf16 %v400_v47, %v399_v46  ;;  %598 = vperm.xlu0 %1253, %v427_v54   ;;  %v426_v63 = vld [vmem:[%s1700_s5] sm:$0xff]  ;;  %v429_v12 = vld [vmem:[%s1702_s7 + $0x8] sm:$0xff]  ;;  %v421_v22 = vld [vmem:[%s1698_s3 + $0x18] sm:$0xff]  ;;  %s379_s29 = scalar_lea.vmem [#allocation2], %s1076_s22 }
  0x1a   : > { %v1513_v25 = vld [vmem:[%s1498_s19 + $0x8] sm:$0xff]  ;;  %1175 = vmatpush3.bf16.msra.mxu0 %v1174_v19  ;;  %v1559_v49 = vld [vmem:[%s1498_s19] sm:$0xff]  ;;  %v1562_v50 = vld [vmem:[%s1498_s19 + $0x18] sm:$0xff]  ;;  %s1010_s26 = sshll.u32 %s379_s29, 4  ;;  %s1645_s26 = int_to_ptr.vmem [resolvable:$true] %s1010_s26 }
  0x1b   : > { %504 = vmatprep.mubr.f32.mxu0 %v1513_v25  ;;  %1177 = vmatprep.subr.bf16.mxu0 %v1176_v20  ;;  %v1567_v51 = vld [vmem:[%s1498_s19 + $0x10] sm:$0xff]  ;;  %v428_v0 = vld [vmem:[%s1702_s7] sm:$0xff]  ;;  %v431_v16 = vld [vmem:[%s1703_s8 + $0x8] sm:$0xff]  ;;  %s1271_s13 = scalar_lea.vmem %s1645_s26, 512  ;;  %s1277_s19 = scalar_lea.vmem %s1276_s15, 1024 }
  0x1c   : > { %v1080_v1 = vld [vmem:[%s1697_s2] ss:$0 sm:$0xff]  ;;  %v435_v17 = vld [vmem:[%s1705_s10 + $0x8] sm:$0xff]  ;;  %v425_v36 = vld [vmem:[%s1699_s4 + $0x18] sm:$0xff]  ;;  %p1272_p11 = scmp.ne.s32.totalorder %s1645_s26, %s1271_s13  ;;  %p1278_p0 = scmp.lt.s32.totalorder %s1645_s26, %s1276_s15 }
  0x1d   : > { %v432_v13 = vld [vmem:[%s1704_s9] sm:$0xff]  ;;  %v433_v19 = vld [vmem:[%s1704_s9 + $0x8] sm:$0xff]  ;;  %v424_v43 = vld [vmem:[%s1699_s4 + $0x10] sm:$0xff]  ;;  %p1279_p1 = scmp.lt.s32.totalorder %s1277_s19, %s1271_s13 }
  0x1e   : > { %1179 = vmatpush3.bf16.msra.mxu0 %v1178_v26  ;;  %v434_v14 = vld [vmem:[%s1705_s10] sm:$0xff]  ;;  %v419_v21 = vld [vmem:[%s1698_s3 + $0x8] sm:$0xff]  ;;  %v420_v26 = vld [vmem:[%s1698_s3 + $0x10] sm:$0xff]  ;;  %p1273_p12 = pnand %p1272_p11, %p1441_p5 }
  0x1f   : > { %1181 = vmatprep.subr.bf16.mxu0 %v1180_v27  ;;  %v430_v15 = vld [vmem:[%s1703_s8] sm:$0xff]  ;;  %v1199_v23 = vpack.c.bf16 %v421_v22, %v419_v21  ;;  %v423_v35 = vld [vmem:[%s1699_s4 + $0x8] sm:$0xff]  ;;  %p1280_p2 = por %p1279_p1, %p1278_p0 }
  0x20   : > { %609 = vperm.xlu1 %1254, %v430_v15   ;;  %v418_v24 = vld [vmem:[%s1698_s3] sm:$0xff]  ;;  %v1203_v37 = vpack.c.bf16 %v425_v36, %v423_v35  ;;  %p1274_p13 = pneg %p1273_p12 }
  0x21   : > { %v1201_v27 = vpack.c.bf16 %v420_v26, %v418_v24  ;;  %v422_v42 = vld [vmem:[%s1699_s4] sm:$0xff] }
  0x22   : > { %1183 = vmatpush3.bf16.msra.mxu0 %v1182_v32  ;;  %p1281_p3 = pnand %p1280_p2, %p1274_p13 }
  0x23   : > { %1185 = vmatprep.subr.bf16.mxu0 %v1184_v33 }
  0x24   : > { %614 = vperm.xlu1 %1254, %v431_v16  }
  0x26   : > { %1187 = vmatpush3.bf16.msra.mxu0 %v1186_v38 }
  0x27   : > { %1189 = vmatprep.subr.bf16.mxu0 %v1188_v39 }
  0x28   : > { %718 = vperm.xlu1 %1254, %v435_v17  }
  0x2a   : > { %1191 = vmatpush3.bf16.msra.mxu0 %v1190_v44  ;;  %v1205_v44 = vpack.c.bf16 %v424_v43, %v422_v42 }
  0x2b   : > { %1193 = vmatprep.subr.bf16.mxu0 %v1192_v45 }
  0x2e   : > { %1195 = vmatpush3.bf16.msra.mxu0 %v1194_v48 }
  0x31   : > { %505 = vmatmul.mubr.f32.vlgmr.msra.gmra.mrb[0].mxu0 %v1559_v49 }
  0x32   : > { %509 = vmatprep.mubr.f32.mxu0 %v1562_v50 }
  0x35   : > { %510 = vmatmul.mubr.f32.gmra.mrb[2].mxu0 %v1567_v51 }
  0x98   : > { %v599_v3 = vpop.permute.xlu0 %598 }
  0x9f   : > { %v610_v20 = vpop.permute.xlu1 %609 }
  0xa3   : > { %v615_v29 = vpop.permute.xlu1 %614 }
  0xa7   : > { %v719_v47 = vpop.permute.xlu1 %718 }
 0x104   : > { %v1132_v56 = vpop.f32.mrb[0].mxu0 }
 0x105   : > { %v1133_v57 = vpop.f32.mrb[1].mxu0 }
 0x106   : > { %v1134_v58 = vadd.f32 %v1133_v57, %v1132_v56 }
 0x108   : > { %v1135_v59 = vpop.f32.mrb[2].mxu0 }
 0x109   : > { %v1136_v60 = vpop.f32.mrb[3].mxu0 }
 0x10a   : > { %v1137_v61 = vadd.f32 %v1136_v60, %v1135_v59 }
 0x10c   : > { %v1197_v62 = vpack.c.bf16 %v1137_v61, %v1134_v58 }
 0x10e   : > { %1198 = vmatpush3.bf16.msra.mxu1 %v1197_v62 }
 0x111   : > { %1152 = vmatmul.mubr.msk.f32.vlgmr.msra.gmra.mrb[0].mxu1 %vm515_vm1, %v426_v63 }
 0x112   : > { %1156 = vmatprep.mubr.msk.f32.mxu1 %vm617_vm2, %v428_v0 }
 0x1e4   : > { %v585_v2 = vpop.f32.mrb[0].mxu1 }
 0x1e5   : > { %v595_v4 = vmul.f32 %v1080_v1, %v585_v2  ;;  %v1153_v5 = vpop.f32.mrb[1].mxu1 }
 0x1e7   : > { %v601_v6 = vadd.f32 %v599_v3, %v595_v4 }
 0x1e9   : > { %v602_v7 = vadd.f32 3.0, %v601_v6 }
 0x1eb   : > { %v603_v8 = vmax.f32 %v602_v7, 0.0 }
 0x1ed   : > { %v604_v9 = vmin.f32 %v603_v8, 6.0 }
 0x1ef   : > { %v605_v10 = vmul.f32 0.16666667, %v604_v9 }
 0x1f1   : > { %v606_v11 = vmul.f32 %v605_v10, %v601_v6 }
 0x1f3   : > { %722 = vrot.lane.b32.xlu0 %v606_v11, %s1339_s12  ;;  %1154 = vmatprep.subr.mxu1 %v606_v11  ;;  %s1651_s12 = scalar_lea.hbm %s1706_s11, %s1099_s25 }
 0x1f4   : > { %1155 = vmatpush3.msra.mxu1 %v606_v11 }
 0x1f5   : > { %1157 = vmatmul.mubr.msk.f32.vlgmr.msra.gmra.mrb[2].mxu1 %vm617_vm2, %v429_v12 }
 0x1f6   : > { %1161 = vmatprep.mubr.msk.f32.mxu1 %vm617_vm2, %v432_v13 }
 0x1f7   : > { %713 = vperm.xlu0 %1253, %v434_v14  }
 0x265   : > { %v723_v18 = vpop.permute.xlu0 %722 }
 0x266   : > { %1159 = vmatprep.subr.mxu1 %v723_v18 }
 0x267   : > { %1160 = vmatpush3.msra.mxu1 %v723_v18 }
 0x268   : > { %1162 = vmatmul.mubr.msk.f32.vlgmr.msra.gmra.mrb[4].mxu1 %vm617_vm2, %v433_v19  ;;  %1200 = vmatprep.subr.bf16.mxu1 %v1199_v23 }
 0x269   : > { %888 = vmatprep.mubr.f32.mxu1 %v1337_v53  ;;  %1202 = vmatpush1.bf16.msra.mxu1 %v1201_v27 }
 0x26a   : > { %1204 = vmatprep.subr.bf16.mxu1 %v1203_v37 }
 0x276   : > { %v714_v52 = vpop.permute.xlu0 %713 }
 0x2c8   : > { %v1158_v28 = vpop.f32.mrb[2].mxu1 }
 0x2c9   : > { %v690_v30 = vpop.f32.mrb[3].mxu1  ;;  %v696_v31 = vadd.f32 %v1158_v28, %v615_v29 }
 0x2ca   : > { %v691_v32 = vadd.f32 %v690_v30, %v610_v20 }
 0x2cb   : > { %v1084_v33 = vmul.f32 -1.442695, %v696_v31 }
 0x2cc   : > { %v1083_v34 = vmul.f32 -1.442695, %v691_v32 }
 0x2cd   : > { %1255 = vpow2.f32 %v1084_v33 }
 0x2ce   : > { %1257 = vpow2.f32 %v1083_v34 }
 0x2d7   : > { %v1256_v38 = vpop.eup %1255 }
 0x2d8   : > { %v1258_v39 = vpop.eup %1257  ;;  %v706_v41 = vadd.f32 1.0, %v1256_v38 }
 0x2d9   : > { %v705_v40 = vadd.f32 1.0, %v1258_v39 }
 0x2db   : > { %1259 = vrcp.f32 %v705_v40 }
 0x2dc   : > { %1261 = vrcp.f32 %v706_v41 }
 0x2e5   : > { %v1260_v45 = vpop.eup %1259 }
 0x2e6   : > { %1089 = vmatmul.mubr.msk.f32.vlgmr.msra.gmra.mrb[6].mxu1 %vm515_vm1, %v1260_v45  ;;  %v1262_v46 = vpop.eup %1261 }
 0x2e7   : > { %894 = vmatprep.mubr.f32.mxu1 %v1337_v53  ;;  %1206 = vmatpush1.bf16.msra.mxu1 %v1205_v44 }
 0x2ea   : > { %1090 = vmatmul.mubr.msk.f32.gmra.mrb[8].mxu1 %vm515_vm1, %v1262_v46 }
 0x2eb   : > { %971 = vmatprep.mubr.f32.mxu1 %v1337_v53 }
 0x33b   : > { %v1163_v48 = vpop.f32.mrb[4].mxu1 }
 0x33c   : > { %v803_v54 = vadd.f32 %v1163_v48, %v719_v47  ;;  %v797_v55 = vpop.f32.mrb[5].mxu1 }
 0x33d   : > { %v798_v56 = vadd.f32 %v797_v55, %v714_v52 }
 0x33e   : > { %v1088_v57 = vmul.f32 -1.442695, %v803_v54 }
 0x33f   : > { %v1087_v58 = vmul.f32 -1.442695, %v798_v56 }
 0x340   : > { %1263 = vpow2.f32 %v1088_v57 }
 0x341   : > { %1265 = vpow2.f32 %v1087_v58 }
 0x34a   : > { %v1264_v59 = vpop.eup %1263 }
 0x34b   : > { %v1266_v60 = vpop.eup %1265  ;;  %v813_v62 = vadd.f32 1.0, %v1264_v59 }
 0x34c   : > { %v812_v61 = vadd.f32 1.0, %v1266_v60 }
 0x34e   : > { %1267 = vrcp.f32 %v812_v61 }
 0x34f   : > { %1269 = vrcp.f32 %v813_v62 }
 0x358   : > { %v1268_v63 = vpop.eup %1267 }
 0x359   : > { %1091 = vmatmul.mubr.msk.f32.vlgmr.msra.gmra.mrb[10].mxu1 %vm515_vm1, %v1268_v63  ;;  %v1270_v0 = vpop.eup %1269 }
 0x35a   : > { %977 = vmatprep.mubr.f32.mxu1 %v1337_v53 }
 0x35d   : > { %1092 = vmatmul.mubr.msk.f32.gmra.mrb[12].mxu1 %vm515_vm1, %v1270_v0 }
 0x3b9   : > { %v890_v1 = vpop.f32.mrb[6].mxu1 }
 0x3ba   : > { %v892_v2 = vpop.f32.mrb[7].mxu1 }
 0x3bd   : > { %v896_v3 = vpop.f32.mrb[8].mxu1 }
 0x3be   : > { %v898_v4 = vpop.f32.mrb[9].mxu1 }
 0x42c   : > { %v973_v5 = vpop.f32.mrb[10].mxu1 }
 0x42d   : > { %v984_v6 = vmul.f32 %v973_v5, %v890_v1  ;;  %v975_v7 = vpop.f32.mrb[11].mxu1 }
 0x42e   : > { %v985_v8 = vmul.f32 %v975_v7, %v892_v2 }
 0x42f   : > { %v988_v9 = vmul.f32 %v984_v6, %v1559_v49 }
 0x430   : > { %v989_v53 = vmul.f32 %v985_v8, %v1513_v25  ;;  %v979_v10 = vpop.f32.mrb[12].mxu1 }
 0x431   : > { %992 = vst [vmem:[%s379_s29] sm:$0xff] %v988_v9  ;;  %v986_v11 = vmul.f32 %v979_v10, %v896_v3  ;;  %v981_v12 = vpop.f32.mrb[13].mxu1 }
 0x432   : > { %993 = vst [vmem:[%s379_s29 + $0x8] sm:$0xff] %v989_v53  ;;  %v987_v13 = vmul.f32 %v981_v12, %v898_v4 }
 0x433   : > { %v990_v14 = vmul.f32 %v986_v11, %v1567_v51 }
 0x434   : > { %v991_v25 = vmul.f32 %v987_v13, %v1562_v50 }
 0x435   : > { %994 = vst [vmem:[%s379_s29 + $0x10] sm:$0xff] %v990_v14 }
 0x436   : > { %995 = vst [vmem:[%s379_s29 + $0x18] sm:$0xff] %v991_v25 }
 0x437   : > { %1284 = shalt.err (!%p1281_p3)
}
 0x438   : > { %s1285_s16 = scalar_lea.hbm %s1651_s12, 512  ;;  %s1289_s25 = scalar_lea.hbm %s1706_s11, 1024 }
 0x439   : > { %p1286_p4 = scmp.ne.s32.totalorder %s1651_s12, %s1285_s16  ;;  %p1290_p9 = scmp.lt.u32.totalorder %s1651_s12, %s1706_s11 }
 0x43a   : > { %p1291_p10 = scmp.lt.u32.totalorder %s1289_s25, %s1285_s16  ;;  %p1293_p12 = scmp.lt.u32.totalorder %s1285_s16, %s1651_s12 }
 0x43b   : > { %p1287_p7 = pnand %p1286_p4, %p1441_p5 }
 0x43c   : > { %p1292_p11 = por %p1291_p10, %p1290_p9 }
 0x43d   : > { %p1288_p8 = pneg %p1287_p7 }
 0x43e   : > { %p1294_p13 = por %p1293_p12, %p1292_p11 }
 0x440   : > { %p1295_p0 = pnand %p1294_p13, %p1288_p8 }
 0x442   : > { %1298 = shalt.err (!%p1295_p0)
}
 0x443   : > { %s1341_s13 = smov 256   ;;  %s1342_s14 = smov 16  }
 0x444   : > { %1207 = dma.vmem_to_hbm [thread:$0]  (%p1441_p5), %s1645_s26, 512, %s1651_s12, %s1654_s21, %s1341_s13, %s1341_s13, %s1342_s14  }
 0x445 PF: > { %p1213_p1 = scmp.ge.s32.totalorder %s1333_s20, 2  ;;  %s1025_s15 = sand.u32 1, %s1321_s17  }
 0x446   : > { %s1026_s19 = scalar_lea.sflag [#allocation3], %s1025_s15 }
 0x447   : > { %p1210_p2 = pnand %p1213_p1, %p1445_p6 }
 0x449   : > { %1316 = dma.done.wait (!%p1210_p2), %s1026_s19, 512  }
 0x44a   : > { %1318 = vsyncadd (!%p1210_p2), %s1026_s19, 4294966784  ;;  %s1712_s16 = sld [smem:[#allocation5_spill]]  ;;  %s1713_s19 = sld [smem:[#allocation6_spill]] }
 0x44b   : > { %p21_p3 = scmp.ge.s32.totalorder %s1428_s23, 4   ;;  %s1714_s17 = smov %s1325_s18 }
 0x44c   : > { %s1716_s20 = smov %s1428_s23 }
 0x44d   :  { %23 = sbr.rel (!%p21_p3) target bundleno = 3 (0x3), region = 99 }
 0x450   : > { %s1715_s18 = smov %s1712_s16 }
 0x454   :  { %1031 = vsyncpa [#allocation3], 1 }
 0x455   :  { %1033 = vsyncpa [#allocation3 + $0x1], 1 }

</bundles_post_ra>
